<compile_context>
chip_gen: v6e
topology: v6e:2x2x1
jax: 0.10.0
libtpu: 0.0.40
codegen_flags: <defaults>
</compile_context>

<pallas_src>
import functools
import math

import numpy as np
import jax
import jax.numpy as jnp
from jax.experimental import pallas as pl
from jax.experimental.pallas import tpu as pltpu


# ----------------------------------------------------------------------------
# Pallas kernel
# ----------------------------------------------------------------------------
def _complex_up_kernel(x1s_ref, x2s_ref, u_ref,
                       w1_ref, b1_ref, bn1_ref,
                       w2_ref, b2_ref, bn2_ref,
                       o_ref, *, L):
    """All arrays are 2-D 'channels x (N*L)' (length on the lane axis).

    x1s_ref : (2*C1, N*L1)  bf16   [x1_r rows | x1_i rows]
    x2s_ref : (2*C2, N*L )  f32    [x2_r rows | x2_i rows]
    u_ref   : (N*L1, N*L )  bf16   batch-block-diagonal upsample+pad matrix
    w*_ref  : (K, 2*Co, 2*Ci) bf16 per-tap block-complex weights
    b*_ref  : (2*Co, 1) f32, bn*_ref : (5, Co, 1) f32
    o_ref   : (2*Cout, N*L) f32    [out_r rows | out_i rows]
    """
    NL = x2s_ref.shape[1]
    Cmid = w1_ref.shape[1] // 2
    Cout = w2_ref.shape[1] // 2
    eps = 1e-5
    f32 = jnp.float32
    bf16 = jnp.bfloat16

    # per-batch length-boundary masks on the flattened (N*L) lane axis (lane = n*L + l)
    lane_pos = jax.lax.broadcasted_iota(jnp.int32, (1, NL), 1) % L
    is_first = lane_pos == 0          # l == 0      -> left neighbour is the zero pad
    is_last = lane_pos == (L - 1)     # l == L - 1  -> right neighbour is the zero pad

    def conv3(x, w_ref, b_ref):
        # Same-padded k=3 block-complex conv as three plain lane-dense 2-D bf16 MXU dots.
        # Window shifts via XLU rolls + boundary masks (no padded VMEM scratch, no
        # weight broadcast). Accumulator starts from the first tap's dot.
        z = jnp.zeros_like(x)
        x_m1 = jnp.where(is_first, z, pltpu.roll(x, shift=1, axis=1))        # x[:, l-1]
        x_p1 = jnp.where(is_last, z, pltpu.roll(x, shift=NL - 1, axis=1))    # x[:, l+1]
        y = jnp.dot(w_ref[0], x_m1.astype(bf16), preferred_element_type=f32)
        y = y + jnp.dot(w_ref[1], x.astype(bf16), preferred_element_type=f32)
        y = y + jnp.dot(w_ref[2], x_p1.astype(bf16), preferred_element_type=f32)
        return y + b_ref[...]                                                # (2*Co, NL) f32

    def cbn_relu(y, bn_ref, C):
        # training-mode complex BN (2x2 covariance whitening) + complex ReLU, all f32
        yr, yi = y[:C], y[C:]
        m = jnp.mean(y, axis=1, keepdims=True)            # [mr | mi]       (2C, 1)
        m2 = jnp.mean(y * y, axis=1, keepdims=True)       # raw 2nd moments
        mr, mi = m[:C], m[C:]
        crr = m2[:C] - mr * mr + eps
        cii = m2[C:] - mi * mi + eps
        cri = jnp.mean(yr * yi, axis=1, keepdims=True) - mr * mi
        det = crr * cii - cri * cri
        s = jnp.sqrt(det)
        # 1/(sqrt(det)*sqrt(trace+2s)) == rsqrt(det*(trace+2s)) -> EUP slot
        inv = jax.lax.rsqrt(det * (crr + cii + 2.0 * s))
        rrr = (cii + s) * inv
        rii = (crr + s) * inv
        rri = -cri * inv
        cr = yr - mr
        ci_ = yi - mi
        nr = rrr * cr + rri * ci_
        ni = rii * ci_ + rri * cr
        bn = bn_ref[...]                                   # (5, C, 1)
        wrr, wii, wri, br, bi = bn[0], bn[1], bn[2], bn[3], bn[4]
        outr = jnp.maximum(wrr * nr + wri * ni + br, 0.0)
        outi = jnp.maximum(wri * nr + wii * ni + bi, 0.0)
        return outr, outi

    # ---- upsample + pad: ONE lane-dense 2-D bf16 MXU dot --------------------------
    x1_up = jnp.dot(x1s_ref[...], u_ref[...], preferred_element_type=f32)   # (2*C1, NL)

    # ---- skip concat: single sublane concat, channel order [x2_r|x2_i|x1_r|x1_i] --
    # (w1 columns are permuted host-side to match this order)
    xcat = jnp.concatenate([x2s_ref[...], x1_up], axis=0)                   # (2*Cin, NL) f32

    # ---- layer 1: block-complex conv -> complex BN -> complex ReLU ----------------
    h1r, h1i = cbn_relu(conv3(xcat, w1_ref, b1_ref), bn1_ref, Cmid)
    h1 = jnp.concatenate([h1r, h1i], axis=0)                                # (2*Cmid, NL)

    # ---- layer 2 -------------------------------------------------------------------
    h2r, h2i = cbn_relu(conv3(h1, w2_ref, b2_ref), bn2_ref, Cout)

    # ---- single stacked lane-dense output ([real rows | imag rows]) ---------------
    o_ref[...] = jnp.concatenate([h2r, h2i], axis=0)


# ----------------------------------------------------------------------------
# Host-side helpers: interpolation matrix and packed weights
# ----------------------------------------------------------------------------
def _upsample_pad_matrix(l_in, l_out, scale=2):
    """(l_in, l_out) matrix = 1-D linear upsample (align_corners=True) by `scale`
    followed by F.pad-style zero padding (or cropping) to length l_out."""
    l_up = l_in * scale
    lo_pad = (l_out - l_up) // 2
    pos = np.arange(l_up, dtype=np.float64) * ((l_in - 1) / max(l_up - 1, 1))
    lo = np.floor(pos).astype(np.int64)
    hi = np.minimum(lo + 1, l_in - 1)
    w = pos - lo
    u = np.zeros((l_in, l_out), np.float32)
    for j in range(l_up):
        col = lo_pad + j
        if 0 <= col < l_out:
            u[lo[j], col] += 1.0 - w[j]
            u[hi[j], col] += w[j]
    return u


def _tconv_to_block_weights(wr_t, wi_t):
    """ConvTranspose1d weights (Cin, Cout, K) of the real/imag sub-convs -> per-tap
    block-complex matrices (K, 2*Cout, 2*Cin) acting on [x_r ; x_i]-stacked channels.
    (stride=1, pad=1 transposed conv == same-padded correlation with flipped kernel
    and swapped in/out channels.)"""
    wr = jnp.flip(wr_t, axis=2).transpose(2, 0, 1)           # (K, Cin, Cout)
    wi = jnp.flip(wi_t, axis=2).transpose(2, 0, 1)
    wr_oc = jnp.transpose(wr, (0, 2, 1))                     # (K, Cout, Cin)
    wi_oc = jnp.transpose(wi, (0, 2, 1))
    top = jnp.concatenate([wr_oc, -wi_oc], axis=2)           # real-output rows
    bot = jnp.concatenate([wi_oc, wr_oc], axis=2)            # imag-output rows
    return jnp.concatenate([top, bot], axis=1)               # (K, 2*Cout, 2*Cin)


def _bn_params(c):
    inv_sqrt2 = 1.0 / math.sqrt(2.0)
    return jnp.stack([jnp.full((c,), inv_sqrt2, jnp.float32),   # Wrr
                      jnp.full((c,), inv_sqrt2, jnp.float32),   # Wii
                      jnp.zeros((c,), jnp.float32),             # Wri
                      jnp.zeros((c,), jnp.float32),             # Br
                      jnp.zeros((c,), jnp.float32)])[..., None]  # (5, C, 1)


def make_params(key, in_channels, out_channels, mid_channels, k=3):
    ks = jax.random.split(key, 8)

    def conv_w(kk, cin, cout):
        scale = 1.0 / math.sqrt(cin * k)
        return scale * jax.random.normal(kk, (cin, cout, k), jnp.float32)

    def conv_b(kk, cout):
        return 0.1 * jax.random.normal(kk, (cout,), jnp.float32)

    # layer 1 (ComplexConvTranspose1d: separate real/imag sub-convs, each with bias)
    w1r_t, w1i_t = conv_w(ks[0], in_channels, mid_channels), conv_w(ks[1], in_channels, mid_channels)
    b1r, b1i = conv_b(ks[2], mid_channels), conv_b(ks[3], mid_channels)
    # layer 2
    w2r_t, w2i_t = conv_w(ks[4], mid_channels, out_channels), conv_w(ks[5], mid_channels, out_channels)
    b2r, b2i = conv_b(ks[6], out_channels), conv_b(ks[7], out_channels)

    # effective complex-conv biases: real = br - bi, imag = br + bi (stacked)
    return {
        "w1": _tconv_to_block_weights(w1r_t, w1i_t),                  # (K, 2*Cmid, 2*Cin)
        "b1": jnp.concatenate([b1r - b1i, b1r + b1i])[:, None],       # (2*Cmid, 1)
        "bn1": _bn_params(mid_channels),                              # (5, Cmid, 1)
        "w2": _tconv_to_block_weights(w2r_t, w2i_t),                  # (K, 2*Cout, 2*Cmid)
        "b2": jnp.concatenate([b2r - b2i, b2r + b2i])[:, None],       # (1->) (2*Cout, 1)
        "bn2": _bn_params(out_channels),                              # (5, Cout, 1)
    }


# ----------------------------------------------------------------------------
# Wrapper: layout plumbing only (real/imag split, lane flattening, final pack)
# ----------------------------------------------------------------------------
def complex_up_1d(x1, x2, params):
    """x1: (N, C1, L1) complex64 (low-res branch), x2: (N, C2, L2) complex64 (skip).
    Returns (N, Cout, L2) complex64 in NCL layout (same as PyTorch)."""
    N, C1, L1 = x1.shape
    _, C2, L2 = x2.shape
    Cin = C1 + C2
    Cout = params["w2"].shape[1] // 2

    def stack_flat(x, dtype):
        # (N, C, L) complex -> (2*C, N*L): [real channel rows | imag channel rows],
        # length-major on the lane axis (lane = n*L + l)
        xr = jnp.real(x).astype(jnp.float32)
        xi = jnp.imag(x).astype(jnp.float32)
        s = jnp.concatenate([xr, xi], axis=1)                     # (N, 2C, L)
        return s.transpose(1, 0, 2).reshape(2 * x.shape[1], -1).astype(dtype)

    x1s = stack_flat(x1, jnp.bfloat16)                            # (2*C1, N*L1)
    x2s = stack_flat(x2, jnp.float32)                             # (2*C2, N*L2)

    # host-built, batch-block-diagonal upsample(+F.pad) matrix -> one 2-D dot in-kernel
    u = _upsample_pad_matrix(L1, L2, scale=2)                     # np (L1, L2)
    u_blk = np.zeros((N * L1, N * L2), np.float32)
    for n in range(N):
        u_blk[n * L1:(n + 1) * L1, n * L2:(n + 1) * L2] = u
    u_blk = jnp.asarray(u_blk, jnp.bfloat16)

    # permute w1's input-channel columns from torch.cat([x2, x1]) order
    # ([x2_r | x1_r | x2_i | x1_i]) to the kernel's concat order ([x2_r | x2_i | x1_r | x1_i])
    perm = (list(range(0, C2)) + list(range(Cin, Cin + C2))
            + list(range(C2, Cin)) + list(range(Cin + C2, 2 * Cin)))
    w1 = jnp.take(params["w1"], jnp.asarray(perm), axis=2).astype(jnp.bfloat16)
    w2 = params["w2"].astype(jnp.bfloat16)

    kernel = functools.partial(_complex_up_kernel, L=L2)
    vspec = pl.BlockSpec(memory_space=pltpu.MemorySpace.VMEM)
    out = pl.pallas_call(
        kernel,
        out_shape=jax.ShapeDtypeStruct((2 * Cout, N * L2), jnp.float32),
        in_specs=[vspec] * 9,
        out_specs=vspec,
    )(x1s, x2s, u_blk,
      w1, params["b1"], params["bn1"],
      w2, params["b2"], params["bn2"])

    out = out.reshape(2 * Cout, N, L2).transpose(1, 0, 2)         # (N, 2*Cout, L2)
    return (out[:, :Cout] + 1j * out[:, Cout:]).astype(jnp.complex64)


if __name__ == "__main__":
    # Complex_Up_1d(in_channels=4, out_channels=4, bilinear=True)
    in_channels, out_channels = 4, 4
    mid_channels = in_channels // 2
    N, L1, L2 = 2, 8, 16
    c_half = in_channels // 2

    key = jax.random.PRNGKey(0)
    k1, k2, k3, k4, kp = jax.random.split(key, 5)
    x1 = (jax.random.normal(k1, (N, c_half, L1), jnp.float32)
          + 1j * jax.random.normal(k2, (N, c_half, L1), jnp.float32)).astype(jnp.complex64)
    x2 = (jax.random.normal(k3, (N, c_half, L2), jnp.float32)
          + 1j * jax.random.normal(k4, (N, c_half, L2), jnp.float32)).astype(jnp.complex64)

    params = make_params(kp, in_channels, out_channels, mid_channels, k=3)

    out = complex_up_1d(x1, x2, params)
    out = jax.block_until_ready(out)

    assert out.shape == (N, out_channels, L2), out.shape
    assert out.dtype == jnp.complex64, out.dtype
    assert bool(jnp.all(jnp.isfinite(jnp.real(out)) & jnp.isfinite(jnp.imag(out))))
    print("KERNEL_OK")
</pallas_src>

<mosaic_0001>
module attributes {stable_mosaic.version = 11 : i64} {
  func.func @_complex_up_kernel(%arg0: memref<4x16xbf16, #tpu.memory_space<vmem>>, %arg1: memref<4x32xf32, #tpu.memory_space<vmem>>, %arg2: memref<16x32xbf16, #tpu.memory_space<vmem>>, %arg3: memref<3x4x8xbf16, #tpu.memory_space<vmem>>, %arg4: memref<4x1xf32, #tpu.memory_space<vmem>>, %arg5: memref<5x2x1xf32, #tpu.memory_space<vmem>>, %arg6: memref<3x8x4xbf16, #tpu.memory_space<vmem>>, %arg7: memref<8x1xf32, #tpu.memory_space<vmem>>, %arg8: memref<5x4x1xf32, #tpu.memory_space<vmem>>, %arg9: memref<8x32xf32, #tpu.memory_space<vmem>>) attributes {dimension_semantics = [], scalar_prefetch = 0 : i64, scratch_operands = 0 : i64, tpu.core_type = #tpu.core_type<tc>} {
    %0 = tpu.iota {dimensions = array<i32: 1>} : vector<1x32xi32>
    %c16_i32 = arith.constant 16 : i32
    %c0_i32 = arith.constant 0 : i32
    %1 = arith.cmpi eq, %c16_i32, %c0_i32 : i32
    %c1_i32 = arith.constant 1 : i32
    %2 = arith.select %1, %c1_i32, %c16_i32 : i32
    %3 = vector.broadcast %2 : i32 to vector<1x32xi32>
    %4 = arith.remsi %0, %3 : vector<1x32xi32>
    %c0_i32_0 = arith.constant 0 : i32
    %5 = vector.broadcast %c0_i32_0 : i32 to vector<1x32xi32>
    %6 = arith.cmpi ne, %4, %5 : vector<1x32xi32>
    %c0_i32_1 = arith.constant 0 : i32
    %7 = vector.broadcast %c0_i32_1 : i32 to vector<1x32xi32>
    %8 = arith.cmpi slt, %4, %7 : vector<1x32xi32>
    %c0_i32_2 = arith.constant 0 : i32
    %9 = arith.cmpi slt, %2, %c0_i32_2 : i32
    %10 = vector.broadcast %9 : i1 to vector<1x32xi1>
    %11 = vector.broadcast %10 : vector<1x32xi1> to vector<1x32xi1>
    %12 = arith.xori %8, %11 : vector<1x32xi1>
    %13 = arith.andi %12, %6 : vector<1x32xi1>
    %14 = vector.broadcast %2 : i32 to vector<1x32xi32>
    %15 = arith.addi %4, %14 : vector<1x32xi32>
    %16 = arith.select %13, %15, %4 : vector<1x32xi1>, vector<1x32xi32>
    %c0_i32_3 = arith.constant 0 : i32
    %17 = vector.broadcast %c0_i32_3 : i32 to vector<1x32xi32>
    %18 = arith.cmpi eq, %16, %17 : vector<1x32xi32>
    %c15_i32 = arith.constant 15 : i32
    %19 = vector.broadcast %c15_i32 : i32 to vector<1x32xi32>
    %20 = arith.cmpi eq, %16, %19 : vector<1x32xi32>
    %c0 = arith.constant 0 : index
    %c0_4 = arith.constant 0 : index
    %21 = vector.load %arg0[%c0, %c0_4] : memref<4x16xbf16, #tpu.memory_space<vmem>>, vector<4x16xbf16>
    %c0_5 = arith.constant 0 : index
    %c0_6 = arith.constant 0 : index
    %22 = vector.load %arg2[%c0_5, %c0_6] : memref<16x32xbf16, #tpu.memory_space<vmem>>, vector<16x32xbf16>
    %cst = arith.constant dense<0.000000e+00> : vector<4x32xf32>
    %23 = tpu.matmul %21, %22, %cst {dimension_numbers = #tpu.dot_dimension_numbers<[1], [0], [0], [1], [0, 0, 1, 1], [], []>} : vector<4x16xbf16>, vector<16x32xbf16>, vector<4x32xf32> -> vector<4x32xf32>
    %c0_7 = arith.constant 0 : index
    %c0_8 = arith.constant 0 : index
    %24 = vector.load %arg1[%c0_7, %c0_8] : memref<4x32xf32, #tpu.memory_space<vmem>>, vector<4x32xf32>
    %25 = tpu.concatenate %24, %23 in 0 : vector<4x32xf32>, vector<4x32xf32> -> vector<8x32xf32>
    %cst_9 = arith.constant 0.000000e+00 : f32
    %26 = vector.broadcast %cst_9 : f32 to vector<8x32xf32>
    %c1_i32_10 = arith.constant 1 : i32
    %27 = tpu.dynamic_rotate %25 by %c1_i32_10 dim 1 : vector<8x32xf32>, i32 -> vector<8x32xf32>
    %28 = vector.shape_cast %18 : vector<1x32xi1> to vector<1x32xi1>
    %29 = vector.broadcast %28 : vector<1x32xi1> to vector<8x32xi1>
    %30 = arith.select %29, %26, %27 : vector<8x32xi1>, vector<8x32xf32>
    %c31_i32 = arith.constant 31 : i32
    %31 = tpu.dynamic_rotate %25 by %c31_i32 dim 1 : vector<8x32xf32>, i32 -> vector<8x32xf32>
    %32 = vector.shape_cast %20 : vector<1x32xi1> to vector<1x32xi1>
    %33 = vector.broadcast %32 : vector<1x32xi1> to vector<8x32xi1>
    %34 = arith.select %33, %26, %31 : vector<8x32xi1>, vector<8x32xf32>
    %c0_11 = arith.constant 0 : index
    %c0_12 = arith.constant 0 : index
    %c0_13 = arith.constant 0 : index
    %35 = vector.load %arg3[%c0_11, %c0_12, %c0_13] : memref<3x4x8xbf16, #tpu.memory_space<vmem>>, vector<1x4x8xbf16>
    %36 = vector.shape_cast %35 : vector<1x4x8xbf16> to vector<4x8xbf16>
    %37 = arith.truncf %30 : vector<8x32xf32> to vector<8x32xbf16>
    %cst_14 = arith.constant dense<0.000000e+00> : vector<4x32xf32>
    %38 = tpu.matmul %36, %37, %cst_14 {dimension_numbers = #tpu.dot_dimension_numbers<[1], [0], [0], [1], [0, 0, 1, 1], [], []>} : vector<4x8xbf16>, vector<8x32xbf16>, vector<4x32xf32> -> vector<4x32xf32>
    %c1 = arith.constant 1 : index
    %c0_15 = arith.constant 0 : index
    %c0_16 = arith.constant 0 : index
    %39 = vector.load %arg3[%c1, %c0_15, %c0_16] : memref<3x4x8xbf16, #tpu.memory_space<vmem>>, vector<1x4x8xbf16>
    %40 = vector.shape_cast %39 : vector<1x4x8xbf16> to vector<4x8xbf16>
    %41 = arith.truncf %25 : vector<8x32xf32> to vector<8x32xbf16>
    %cst_17 = arith.constant dense<0.000000e+00> : vector<4x32xf32>
    %42 = tpu.matmul %40, %41, %cst_17 {dimension_numbers = #tpu.dot_dimension_numbers<[1], [0], [0], [1], [0, 0, 1, 1], [], []>} : vector<4x8xbf16>, vector<8x32xbf16>, vector<4x32xf32> -> vector<4x32xf32>
    %43 = arith.addf %38, %42 : vector<4x32xf32>
    %c2 = arith.constant 2 : index
    %c0_18 = arith.constant 0 : index
    %c0_19 = arith.constant 0 : index
    %44 = vector.load %arg3[%c2, %c0_18, %c0_19] : memref<3x4x8xbf16, #tpu.memory_space<vmem>>, vector<1x4x8xbf16>
    %45 = vector.shape_cast %44 : vector<1x4x8xbf16> to vector<4x8xbf16>
    %46 = arith.truncf %34 : vector<8x32xf32> to vector<8x32xbf16>
    %cst_20 = arith.constant dense<0.000000e+00> : vector<4x32xf32>
    %47 = tpu.matmul %45, %46, %cst_20 {dimension_numbers = #tpu.dot_dimension_numbers<[1], [0], [0], [1], [0, 0, 1, 1], [], []>} : vector<4x8xbf16>, vector<8x32xbf16>, vector<4x32xf32> -> vector<4x32xf32>
    %48 = arith.addf %43, %47 : vector<4x32xf32>
    %c0_21 = arith.constant 0 : index
    %c0_22 = arith.constant 0 : index
    %49 = vector.load %arg4[%c0_21, %c0_22] : memref<4x1xf32, #tpu.memory_space<vmem>>, vector<4x1xf32>
    %50 = vector.broadcast %49 : vector<4x1xf32> to vector<4x32xf32>
    %51 = arith.addf %48, %50 : vector<4x32xf32>
    %52 = vector.extract_strided_slice %51 {offsets = [0, 0], sizes = [2, 32], strides = [1, 1]} : vector<4x32xf32> to vector<2x32xf32>
    %53 = vector.extract_strided_slice %51 {offsets = [2, 0], sizes = [2, 32], strides = [1, 1]} : vector<4x32xf32> to vector<2x32xf32>
    %cst_23 = arith.constant dense<0.000000e+00> : vector<4xf32>
    %54 = vector.multi_reduction <add>, %51, %cst_23 [1] : vector<4x32xf32> to vector<4xf32>
    %55 = vector.shape_cast %54 : vector<4xf32> to vector<4x1xf32>
    %cst_24 = arith.constant 3.200000e+01 : f32
    %56 = vector.broadcast %cst_24 : f32 to vector<4x1xf32>
    %57 = arith.divf %55, %56 : vector<4x1xf32>
    %58 = arith.mulf %51, %51 : vector<4x32xf32>
    %cst_25 = arith.constant dense<0.000000e+00> : vector<4xf32>
    %59 = vector.multi_reduction <add>, %58, %cst_25 [1] : vector<4x32xf32> to vector<4xf32>
    %60 = vector.shape_cast %59 : vector<4xf32> to vector<4x1xf32>
    %cst_26 = arith.constant 3.200000e+01 : f32
    %61 = vector.broadcast %cst_26 : f32 to vector<4x1xf32>
    %62 = arith.divf %60, %61 : vector<4x1xf32>
    %63 = vector.extract_strided_slice %57 {offsets = [0, 0], sizes = [2, 1], strides = [1, 1]} : vector<4x1xf32> to vector<2x1xf32>
    %64 = vector.extract_strided_slice %57 {offsets = [2, 0], sizes = [2, 1], strides = [1, 1]} : vector<4x1xf32> to vector<2x1xf32>
    %65 = vector.extract_strided_slice %62 {offsets = [0, 0], sizes = [2, 1], strides = [1, 1]} : vector<4x1xf32> to vector<2x1xf32>
    %66 = arith.mulf %63, %63 : vector<2x1xf32>
    %67 = arith.subf %65, %66 : vector<2x1xf32>
    %cst_27 = arith.constant 9.99999974E-6 : f32
    %68 = vector.broadcast %cst_27 : f32 to vector<2x1xf32>
    %69 = arith.addf %67, %68 : vector<2x1xf32>
    %70 = vector.extract_strided_slice %62 {offsets = [2, 0], sizes = [2, 1], strides = [1, 1]} : vector<4x1xf32> to vector<2x1xf32>
    %71 = arith.mulf %64, %64 : vector<2x1xf32>
    %72 = arith.subf %70, %71 : vector<2x1xf32>
    %cst_28 = arith.constant 9.99999974E-6 : f32
    %73 = vector.broadcast %cst_28 : f32 to vector<2x1xf32>
    %74 = arith.addf %72, %73 : vector<2x1xf32>
    %75 = arith.mulf %52, %53 : vector<2x32xf32>
    %cst_29 = arith.constant dense<0.000000e+00> : vector<2xf32>
    %76 = vector.multi_reduction <add>, %75, %cst_29 [1] : vector<2x32xf32> to vector<2xf32>
    %77 = vector.shape_cast %76 : vector<2xf32> to vector<2x1xf32>
    %cst_30 = arith.constant 3.200000e+01 : f32
    %78 = vector.broadcast %cst_30 : f32 to vector<2x1xf32>
    %79 = arith.divf %77, %78 : vector<2x1xf32>
    %80 = arith.mulf %63, %64 : vector<2x1xf32>
    %81 = arith.subf %79, %80 : vector<2x1xf32>
    %82 = arith.mulf %69, %74 : vector<2x1xf32>
    %83 = arith.mulf %81, %81 : vector<2x1xf32>
    %84 = arith.subf %82, %83 : vector<2x1xf32>
    %85 = math.sqrt %84 : vector<2x1xf32>
    %86 = arith.addf %69, %74 : vector<2x1xf32>
    %cst_31 = arith.constant 2.000000e+00 : f32
    %87 = vector.broadcast %cst_31 : f32 to vector<2x1xf32>
    %88 = arith.mulf %87, %85 : vector<2x1xf32>
    %89 = arith.addf %86, %88 : vector<2x1xf32>
    %90 = arith.mulf %84, %89 : vector<2x1xf32>
    %91 = math.rsqrt %90 : vector<2x1xf32>
    %92 = arith.addf %74, %85 : vector<2x1xf32>
    %93 = arith.mulf %92, %91 : vector<2x1xf32>
    %94 = arith.addf %69, %85 : vector<2x1xf32>
    %95 = arith.mulf %94, %91 : vector<2x1xf32>
    %cst_32 = arith.constant 0.000000e+00 : f32
    %96 = vector.broadcast %cst_32 : f32 to vector<2x1xf32>
    %97 = arith.subf %96, %81 : vector<2x1xf32>
    %98 = arith.mulf %97, %91 : vector<2x1xf32>
    %99 = vector.broadcast %63 : vector<2x1xf32> to vector<2x32xf32>
    %100 = arith.subf %52, %99 : vector<2x32xf32>
    %101 = vector.broadcast %64 : vector<2x1xf32> to vector<2x32xf32>
    %102 = arith.subf %53, %101 : vector<2x32xf32>
    %103 = vector.broadcast %93 : vector<2x1xf32> to vector<2x32xf32>
    %104 = arith.mulf %103, %100 : vector<2x32xf32>
    %105 = vector.broadcast %98 : vector<2x1xf32> to vector<2x32xf32>
    %106 = arith.mulf %105, %102 : vector<2x32xf32>
    %107 = arith.addf %104, %106 : vector<2x32xf32>
    %108 = vector.broadcast %95 : vector<2x1xf32> to vector<2x32xf32>
    %109 = arith.mulf %108, %102 : vector<2x32xf32>
    %110 = vector.broadcast %98 : vector<2x1xf32> to vector<2x32xf32>
    %111 = arith.mulf %110, %100 : vector<2x32xf32>
    %112 = arith.addf %109, %111 : vector<2x32xf32>
    %c0_33 = arith.constant 0 : index
    %c0_34 = arith.constant 0 : index
    %c0_35 = arith.constant 0 : index
    %113 = vector.load %arg5[%c0_33, %c0_34, %c0_35] : memref<5x2x1xf32, #tpu.memory_space<vmem>>, vector<5x2x1xf32>
    %114 = vector.extract_strided_slice %113 {offsets = [0, 0, 0], sizes = [1, 2, 1], strides = [1, 1, 1]} : vector<5x2x1xf32> to vector<1x2x1xf32>
    %115 = vector.shape_cast %114 : vector<1x2x1xf32> to vector<2x1xf32>
    %116 = vector.extract_strided_slice %113 {offsets = [1, 0, 0], sizes = [1, 2, 1], strides = [1, 1, 1]} : vector<5x2x1xf32> to vector<1x2x1xf32>
    %117 = vector.shape_cast %116 : vector<1x2x1xf32> to vector<2x1xf32>
    %118 = vector.extract_strided_slice %113 {offsets = [2, 0, 0], sizes = [1, 2, 1], strides = [1, 1, 1]} : vector<5x2x1xf32> to vector<1x2x1xf32>
    %119 = vector.shape_cast %118 : vector<1x2x1xf32> to vector<2x1xf32>
    %120 = vector.extract_strided_slice %113 {offsets = [3, 0, 0], sizes = [1, 2, 1], strides = [1, 1, 1]} : vector<5x2x1xf32> to vector<1x2x1xf32>
    %121 = vector.shape_cast %120 : vector<1x2x1xf32> to vector<2x1xf32>
    %122 = vector.extract_strided_slice %113 {offsets = [4, 0, 0], sizes = [1, 2, 1], strides = [1, 1, 1]} : vector<5x2x1xf32> to vector<1x2x1xf32>
    %123 = vector.shape_cast %122 : vector<1x2x1xf32> to vector<2x1xf32>
    %124 = vector.broadcast %115 : vector<2x1xf32> to vector<2x32xf32>
    %125 = arith.mulf %124, %107 : vector<2x32xf32>
    %126 = vector.broadcast %119 : vector<2x1xf32> to vector<2x32xf32>
    %127 = arith.mulf %126, %112 : vector<2x32xf32>
    %128 = arith.addf %125, %127 : vector<2x32xf32>
    %129 = vector.broadcast %121 : vector<2x1xf32> to vector<2x32xf32>
    %130 = arith.addf %128, %129 : vector<2x32xf32>
    %cst_36 = arith.constant 0.000000e+00 : f32
    %131 = vector.broadcast %cst_36 : f32 to vector<2x32xf32>
    %132 = arith.maximumf %130, %131 : vector<2x32xf32>
    %133 = vector.broadcast %119 : vector<2x1xf32> to vector<2x32xf32>
    %134 = arith.mulf %133, %107 : vector<2x32xf32>
    %135 = vector.broadcast %117 : vector<2x1xf32> to vector<2x32xf32>
    %136 = arith.mulf %135, %112 : vector<2x32xf32>
    %137 = arith.addf %134, %136 : vector<2x32xf32>
    %138 = vector.broadcast %123 : vector<2x1xf32> to vector<2x32xf32>
    %139 = arith.addf %137, %138 : vector<2x32xf32>
    %cst_37 = arith.constant 0.000000e+00 : f32
    %140 = vector.broadcast %cst_37 : f32 to vector<2x32xf32>
    %141 = arith.maximumf %139, %140 : vector<2x32xf32>
    %142 = tpu.concatenate %132, %141 in 0 : vector<2x32xf32>, vector<2x32xf32> -> vector<4x32xf32>
    %cst_38 = arith.constant 0.000000e+00 : f32
    %143 = vector.broadcast %cst_38 : f32 to vector<4x32xf32>
    %c1_i32_39 = arith.constant 1 : i32
    %144 = tpu.dynamic_rotate %142 by %c1_i32_39 dim 1 : vector<4x32xf32>, i32 -> vector<4x32xf32>
    %145 = vector.shape_cast %18 : vector<1x32xi1> to vector<1x32xi1>
    %146 = vector.broadcast %145 : vector<1x32xi1> to vector<4x32xi1>
    %147 = arith.select %146, %143, %144 : vector<4x32xi1>, vector<4x32xf32>
    %c31_i32_40 = arith.constant 31 : i32
    %148 = tpu.dynamic_rotate %142 by %c31_i32_40 dim 1 : vector<4x32xf32>, i32 -> vector<4x32xf32>
    %149 = vector.shape_cast %20 : vector<1x32xi1> to vector<1x32xi1>
    %150 = vector.broadcast %149 : vector<1x32xi1> to vector<4x32xi1>
    %151 = arith.select %150, %143, %148 : vector<4x32xi1>, vector<4x32xf32>
    %c0_41 = arith.constant 0 : index
    %c0_42 = arith.constant 0 : index
    %c0_43 = arith.constant 0 : index
    %152 = vector.load %arg6[%c0_41, %c0_42, %c0_43] : memref<3x8x4xbf16, #tpu.memory_space<vmem>>, vector<1x8x4xbf16>
    %153 = vector.shape_cast %152 : vector<1x8x4xbf16> to vector<8x4xbf16>
    %154 = arith.truncf %147 : vector<4x32xf32> to vector<4x32xbf16>
    %cst_44 = arith.constant dense<0.000000e+00> : vector<8x32xf32>
    %155 = tpu.matmul %153, %154, %cst_44 {dimension_numbers = #tpu.dot_dimension_numbers<[1], [0], [0], [1], [0, 0, 1, 1], [], []>} : vector<8x4xbf16>, vector<4x32xbf16>, vector<8x32xf32> -> vector<8x32xf32>
    %c1_45 = arith.constant 1 : index
    %c0_46 = arith.constant 0 : index
    %c0_47 = arith.constant 0 : index
    %156 = vector.load %arg6[%c1_45, %c0_46, %c0_47] : memref<3x8x4xbf16, #tpu.memory_space<vmem>>, vector<1x8x4xbf16>
    %157 = vector.shape_cast %156 : vector<1x8x4xbf16> to vector<8x4xbf16>
    %158 = arith.truncf %142 : vector<4x32xf32> to vector<4x32xbf16>
    %cst_48 = arith.constant dense<0.000000e+00> : vector<8x32xf32>
    %159 = tpu.matmul %157, %158, %cst_48 {dimension_numbers = #tpu.dot_dimension_numbers<[1], [0], [0], [1], [0, 0, 1, 1], [], []>} : vector<8x4xbf16>, vector<4x32xbf16>, vector<8x32xf32> -> vector<8x32xf32>
    %160 = arith.addf %155, %159 : vector<8x32xf32>
    %c2_49 = arith.constant 2 : index
    %c0_50 = arith.constant 0 : index
    %c0_51 = arith.constant 0 : index
    %161 = vector.load %arg6[%c2_49, %c0_50, %c0_51] : memref<3x8x4xbf16, #tpu.memory_space<vmem>>, vector<1x8x4xbf16>
    %162 = vector.shape_cast %161 : vector<1x8x4xbf16> to vector<8x4xbf16>
    %163 = arith.truncf %151 : vector<4x32xf32> to vector<4x32xbf16>
    %cst_52 = arith.constant dense<0.000000e+00> : vector<8x32xf32>
    %164 = tpu.matmul %162, %163, %cst_52 {dimension_numbers = #tpu.dot_dimension_numbers<[1], [0], [0], [1], [0, 0, 1, 1], [], []>} : vector<8x4xbf16>, vector<4x32xbf16>, vector<8x32xf32> -> vector<8x32xf32>
    %165 = arith.addf %160, %164 : vector<8x32xf32>
    %c0_53 = arith.constant 0 : index
    %c0_54 = arith.constant 0 : index
    %166 = vector.load %arg7[%c0_53, %c0_54] : memref<8x1xf32, #tpu.memory_space<vmem>>, vector<8x1xf32>
    %167 = vector.broadcast %166 : vector<8x1xf32> to vector<8x32xf32>
    %168 = arith.addf %165, %167 : vector<8x32xf32>
    %169 = vector.extract_strided_slice %168 {offsets = [0, 0], sizes = [4, 32], strides = [1, 1]} : vector<8x32xf32> to vector<4x32xf32>
    %170 = vector.extract_strided_slice %168 {offsets = [4, 0], sizes = [4, 32], strides = [1, 1]} : vector<8x32xf32> to vector<4x32xf32>
    %cst_55 = arith.constant dense<0.000000e+00> : vector<8xf32>
    %171 = vector.multi_reduction <add>, %168, %cst_55 [1] : vector<8x32xf32> to vector<8xf32>
    %172 = vector.shape_cast %171 : vector<8xf32> to vector<8x1xf32>
    %cst_56 = arith.constant 3.200000e+01 : f32
    %173 = vector.broadcast %cst_56 : f32 to vector<8x1xf32>
    %174 = arith.divf %172, %173 : vector<8x1xf32>
    %175 = arith.mulf %168, %168 : vector<8x32xf32>
    %cst_57 = arith.constant dense<0.000000e+00> : vector<8xf32>
    %176 = vector.multi_reduction <add>, %175, %cst_57 [1] : vector<8x32xf32> to vector<8xf32>
    %177 = vector.shape_cast %176 : vector<8xf32> to vector<8x1xf32>
    %cst_58 = arith.constant 3.200000e+01 : f32
    %178 = vector.broadcast %cst_58 : f32 to vector<8x1xf32>
    %179 = arith.divf %177, %178 : vector<8x1xf32>
    %180 = vector.extract_strided_slice %174 {offsets = [0, 0], sizes = [4, 1], strides = [1, 1]} : vector<8x1xf32> to vector<4x1xf32>
    %181 = vector.extract_strided_slice %174 {offsets = [4, 0], sizes = [4, 1], strides = [1, 1]} : vector<8x1xf32> to vector<4x1xf32>
    %182 = vector.extract_strided_slice %179 {offsets = [0, 0], sizes = [4, 1], strides = [1, 1]} : vector<8x1xf32> to vector<4x1xf32>
    %183 = arith.mulf %180, %180 : vector<4x1xf32>
    %184 = arith.subf %182, %183 : vector<4x1xf32>
    %cst_59 = arith.constant 9.99999974E-6 : f32
    %185 = vector.broadcast %cst_59 : f32 to vector<4x1xf32>
    %186 = arith.addf %184, %185 : vector<4x1xf32>
    %187 = vector.extract_strided_slice %179 {offsets = [4, 0], sizes = [4, 1], strides = [1, 1]} : vector<8x1xf32> to vector<4x1xf32>
    %188 = arith.mulf %181, %181 : vector<4x1xf32>
    %189 = arith.subf %187, %188 : vector<4x1xf32>
    %cst_60 = arith.constant 9.99999974E-6 : f32
    %190 = vector.broadcast %cst_60 : f32 to vector<4x1xf32>
    %191 = arith.addf %189, %190 : vector<4x1xf32>
    %192 = arith.mulf %169, %170 : vector<4x32xf32>
    %cst_61 = arith.constant dense<0.000000e+00> : vector<4xf32>
    %193 = vector.multi_reduction <add>, %192, %cst_61 [1] : vector<4x32xf32> to vector<4xf32>
    %194 = vector.shape_cast %193 : vector<4xf32> to vector<4x1xf32>
    %cst_62 = arith.constant 3.200000e+01 : f32
    %195 = vector.broadcast %cst_62 : f32 to vector<4x1xf32>
    %196 = arith.divf %194, %195 : vector<4x1xf32>
    %197 = arith.mulf %180, %181 : vector<4x1xf32>
    %198 = arith.subf %196, %197 : vector<4x1xf32>
    %199 = arith.mulf %186, %191 : vector<4x1xf32>
    %200 = arith.mulf %198, %198 : vector<4x1xf32>
    %201 = arith.subf %199, %200 : vector<4x1xf32>
    %202 = math.sqrt %201 : vector<4x1xf32>
    %203 = arith.addf %186, %191 : vector<4x1xf32>
    %cst_63 = arith.constant 2.000000e+00 : f32
    %204 = vector.broadcast %cst_63 : f32 to vector<4x1xf32>
    %205 = arith.mulf %204, %202 : vector<4x1xf32>
    %206 = arith.addf %203, %205 : vector<4x1xf32>
    %207 = arith.mulf %201, %206 : vector<4x1xf32>
    %208 = math.rsqrt %207 : vector<4x1xf32>
    %209 = arith.addf %191, %202 : vector<4x1xf32>
    %210 = arith.mulf %209, %208 : vector<4x1xf32>
    %211 = arith.addf %186, %202 : vector<4x1xf32>
    %212 = arith.mulf %211, %208 : vector<4x1xf32>
    %cst_64 = arith.constant 0.000000e+00 : f32
    %213 = vector.broadcast %cst_64 : f32 to vector<4x1xf32>
    %214 = arith.subf %213, %198 : vector<4x1xf32>
    %215 = arith.mulf %214, %208 : vector<4x1xf32>
    %216 = vector.broadcast %180 : vector<4x1xf32> to vector<4x32xf32>
    %217 = arith.subf %169, %216 : vector<4x32xf32>
    %218 = vector.broadcast %181 : vector<4x1xf32> to vector<4x32xf32>
    %219 = arith.subf %170, %218 : vector<4x32xf32>
    %220 = vector.broadcast %210 : vector<4x1xf32> to vector<4x32xf32>
    %221 = arith.mulf %220, %217 : vector<4x32xf32>
    %222 = vector.broadcast %215 : vector<4x1xf32> to vector<4x32xf32>
    %223 = arith.mulf %222, %219 : vector<4x32xf32>
    %224 = arith.addf %221, %223 : vector<4x32xf32>
    %225 = vector.broadcast %212 : vector<4x1xf32> to vector<4x32xf32>
    %226 = arith.mulf %225, %219 : vector<4x32xf32>
    %227 = vector.broadcast %215 : vector<4x1xf32> to vector<4x32xf32>
    %228 = arith.mulf %227, %217 : vector<4x32xf32>
    %229 = arith.addf %226, %228 : vector<4x32xf32>
    %c0_65 = arith.constant 0 : index
    %c0_66 = arith.constant 0 : index
    %c0_67 = arith.constant 0 : index
    %230 = vector.load %arg8[%c0_65, %c0_66, %c0_67] : memref<5x4x1xf32, #tpu.memory_space<vmem>>, vector<5x4x1xf32>
    %231 = vector.extract_strided_slice %230 {offsets = [0, 0, 0], sizes = [1, 4, 1], strides = [1, 1, 1]} : vector<5x4x1xf32> to vector<1x4x1xf32>
    %232 = vector.shape_cast %231 : vector<1x4x1xf32> to vector<4x1xf32>
    %233 = vector.extract_strided_slice %230 {offsets = [1, 0, 0], sizes = [1, 4, 1], strides = [1, 1, 1]} : vector<5x4x1xf32> to vector<1x4x1xf32>
    %234 = vector.shape_cast %233 : vector<1x4x1xf32> to vector<4x1xf32>
    %235 = vector.extract_strided_slice %230 {offsets = [2, 0, 0], sizes = [1, 4, 1], strides = [1, 1, 1]} : vector<5x4x1xf32> to vector<1x4x1xf32>
    %236 = vector.shape_cast %235 : vector<1x4x1xf32> to vector<4x1xf32>
    %237 = vector.extract_strided_slice %230 {offsets = [3, 0, 0], sizes = [1, 4, 1], strides = [1, 1, 1]} : vector<5x4x1xf32> to vector<1x4x1xf32>
    %238 = vector.shape_cast %237 : vector<1x4x1xf32> to vector<4x1xf32>
    %239 = vector.extract_strided_slice %230 {offsets = [4, 0, 0], sizes = [1, 4, 1], strides = [1, 1, 1]} : vector<5x4x1xf32> to vector<1x4x1xf32>
    %240 = vector.shape_cast %239 : vector<1x4x1xf32> to vector<4x1xf32>
    %241 = vector.broadcast %232 : vector<4x1xf32> to vector<4x32xf32>
    %242 = arith.mulf %241, %224 : vector<4x32xf32>
    %243 = vector.broadcast %236 : vector<4x1xf32> to vector<4x32xf32>
    %244 = arith.mulf %243, %229 : vector<4x32xf32>
    %245 = arith.addf %242, %244 : vector<4x32xf32>
    %246 = vector.broadcast %238 : vector<4x1xf32> to vector<4x32xf32>
    %247 = arith.addf %245, %246 : vector<4x32xf32>
    %cst_68 = arith.constant 0.000000e+00 : f32
    %248 = vector.broadcast %cst_68 : f32 to vector<4x32xf32>
    %249 = arith.maximumf %247, %248 : vector<4x32xf32>
    %250 = vector.broadcast %236 : vector<4x1xf32> to vector<4x32xf32>
    %251 = arith.mulf %250, %224 : vector<4x32xf32>
    %252 = vector.broadcast %234 : vector<4x1xf32> to vector<4x32xf32>
    %253 = arith.mulf %252, %229 : vector<4x32xf32>
    %254 = arith.addf %251, %253 : vector<4x32xf32>
    %255 = vector.broadcast %240 : vector<4x1xf32> to vector<4x32xf32>
    %256 = arith.addf %254, %255 : vector<4x32xf32>
    %cst_69 = arith.constant 0.000000e+00 : f32
    %257 = vector.broadcast %cst_69 : f32 to vector<4x32xf32>
    %258 = arith.maximumf %256, %257 : vector<4x32xf32>
    %259 = tpu.concatenate %249, %258 in 0 : vector<4x32xf32>, vector<4x32xf32> -> vector<8x32xf32>
    %c0_70 = arith.constant 0 : index
    %c0_71 = arith.constant 0 : index
    %260 = vector.load %arg9[%c0_70, %c0_71] : memref<8x32xf32, #tpu.memory_space<vmem>>, vector<8x32xf32>
    tpu.vector_store %arg9[%c0_70, %c0_71], %259 {strides = array<i32>} : memref<8x32xf32, #tpu.memory_space<vmem>>, vector<8x32xf32>,
    return
  }
}

</mosaic_0001>

<bundles_post_ra>
// kernel: tpu_custom_call.1
= control target key start
LH: loop header
LB: loop body
LE: loop exit
PB: predicated region body
PF: predicated region fallthrough
CT: control target
= control target key end

     0   :  { %v844_v1 = vmov 0.0   ;;  %s1053_s0 = inlined_call_operand.vmem [shape: bf16[4,16], index: 0, kind: input, shape index: {}]   ;;  %s1054_s1 = inlined_call_operand.vmem [shape: f32[4,32], index: 1, kind: input, shape index: {}]   ;;  %s1055_s2 = inlined_call_operand.vmem [shape: bf16[16,32], index: 2, kind: input, shape index: {}]   ;;  %s1056_s3 = inlined_call_operand.vmem [shape: bf16[3,4,8], index: 3, kind: input, shape index: {}]   ;;  %s1057_s4 = inlined_call_operand.vmem [shape: f32[4,1], index: 4, kind: input, shape index: {}]   ;;  %s1058_s5 = inlined_call_operand.vmem [shape: f32[5,2,1], index: 5, kind: input, shape index: {}]   ;;  %s1059_s6 = inlined_call_operand.vmem [shape: bf16[3,8,4], index: 6, kind: input, shape index: {}]   ;;  %s1060_s7 = inlined_call_operand.vmem [shape: f32[8,1], index: 7, kind: input, shape index: {}]   ;;  %s1061_s8 = inlined_call_operand.vmem [shape: f32[5,4,1], index: 8, kind: input, shape index: {}]   ;;  %s1062_s9 = inlined_call_operand.hbm [shape: f32[8,32], index: 9, kind: output, shape index: {}]  }
   0x1   :  { %v813_v0 = vld [vmem:[%s1055_s2] sm:$0xff]   ;;  %762 = vmatprep.subr.bf16.mxu0 %v844_v1  ;;  %768 = vmatprep.subr.bf16.mxu1 %v844_v1 }
   0x2   :  { %14 = vsyncpa [#allocation3], 0  ;;  %763 = vmatpush3.bf16.msra.mxu0 %v813_v0  ;;  %vm845_vm0 = vmmov 0   ;;  %v50_v2 = vld [vmem:[%s1053_s0] sm:$0x3]  ;;  %vm59_vm1 = vcmask 130048   ;;  %v34_v23 = vlaneseq }
   0x3   :  { %764 = vmatprep.mubr.msk.bf16.mxu0 %vm845_vm0, %v844_v1  ;;  %770 = vmatprep.mubr.msk.bf16.mxu1 %vm845_vm0, %v844_v1  ;;  %v103_v4 = vld [vmem:[%s1054_s1] sm:$0xf]  ;;  %vm107_vm2 = vcmask 1043456   ;;  %s846_s0 = smov 32   ;;  %vm134_vm3 = vcmask 64512   ;;  %vm109_vm4 = vcmask 1047808  }
   0x4   :  { %774 = vmatprep.subr.bf16.mxu0 %v844_v1  ;;  %v738_v12 = vld [vmem:[%s1056_s3 + $0x2] sm:$0x3]  ;;  %v847_v18 = vmov 0   ;;  %s848_s17 = smov 97   ;;  %s849_s18 = smov 127   ;;  %v35_v24 = vand.u32 127, %v34_v23 }
   0x5   :  { %765 = vmatmul.mubr.msk.bf16.vlgmr.msra.gmra.mxu0 %vm59_vm1, %v50_v2  ;;  %v277_v16 = vld [vmem:[%s1057_s4] sm:$0xf]  ;;  %811 = vset.pattern.permute.xlu0 %v847_v18  ;;  %v741_v37 = vld [vmem:[%s1056_s3 + $0x4] sm:$0x3]  ;;  %vm284_vm7 = vcmask 257024   ;;  %vm302_vm8 = vcmask 254976  }
   0x6   :  { %776 = vmatprep.mubr.msk.bf16.mxu0 %vm845_vm0, %v844_v1  ;;  %812 = vset.pattern.permute.xlu1 %v847_v18  ;;  %v40_v25 = vand.u32 15, %v35_v24  ;;  %v129_v34 = vld [vmem:[%s1056_s3] sm:$0x3]  ;;  %vm418_vm11 = vcmask 1041408   ;;  %vm440_vm12 = vcmask 31744   ;;  %vm590_vm13 = vcmask 261120  }
   0x7   :  { %v746_v30 = vld [vmem:[%s1059_s6 + $0x8] sm:$0xf] }
   0x8   :  { %vm937_vm5 = vcmp.eq.s32.totalorder %v40_v25, 0  ;;  %vm943_vm6 = vcmp.eq.s32.totalorder %v40_v25, 15  ;;  %v374_v25 = vld [vmem:[%s1058_s5 + $0x4] sm:$0x3] }
  0xc5   :  { %v97_v3 = vpop.f32.mrf.mxu0 }
  0xc6   :  { %v105_v5 = vrot.slane %v97_v3, 4 }
  0xc7   :  { %v766_v6 = vpop.f32.mrf.mxu0 }
  0xc8   :  { %v108_v7 = vsel %vm107_vm2, %v103_v4, %v105_v5 }
  0xc9   :  { %110 = vrot.lane.b32.xlu0 %v108_v7, %s846_s0  ;;  %v100_v8 = vpop.f32.mrf.mxu0  ;;  %v133_v9 = vpack.c.bf16 %v108_v7, %v108_v7 }
  0xcb   :  { %v767_v10 = vpop.f32.mrf.mxu0  ;;  %v139_v11 = vsel %vm107_vm2, %v133_v9, 0 }
  0xcc   :  { %769 = vmatpush3.bf16.msra.mxu1 %v139_v11 }
  0xcd   :  { %780 = vmatprep.subr.bf16.mxu1 %v844_v1 }
  0xcf   :  { %771 = vmatmul.mubr.msk.bf16.vlgmr.msra.gmra.mxu1 %vm134_vm3, %v738_v12 }
  0xd0   :  { %782 = vmatprep.mubr.msk.bf16.mxu1 %vm845_vm0, %v844_v1 }
 0x13b   :  { %v111_v13 = vpop.permute.xlu0 %110 }
 0x13c   :  { %v112_v14 = vsel %vm109_vm4, %v111_v13, %v108_v7 }
 0x13d   :  { %113 = vrot.lane.b32.xlu0 %v112_v14, %s846_s0 }
 0x141   :  { %280 = vperm.xlu0 %811, %v277_v16  }
 0x18f   :  { %v175_v19 = vpop.f32.mrf.mxu1 }
 0x191   :  { %v772_v20 = vpop.f32.mrf.mxu1 }
 0x193   :  { %v178_v21 = vpop.f32.mrf.mxu1 }
 0x195   :  { %v773_v22 = vpop.f32.mrf.mxu1 }
 0x1af   :  { %v114_v15 = vpop.permute.xlu0 %113 }
 0x1b0   :  { %v115_v17 = vsel %vm109_vm4, %v114_v15, %v108_v7 }
 0x1b1   :  { %119 = vrot.lane.b32.xlu1 %v115_v17, %s848_s17 }
 0x1b5   :  { %125 = vrot.lane.b32.xlu1 %v115_v17, %s849_s18 }
 0x1bc   :  { %v281_v41 = vpop.permute.xlu0 %280 }
 0x223   :  { %v120_v27 = vpop.permute.xlu1 %119 }
 0x224   :  { %v122_v28 = vsel %vm937_vm5, 0.0, %v120_v27 }
 0x225   :  { %v130_v29 = vpack.c.bf16 %v122_v28, %v122_v28 }
 0x227   :  { %v185_v31 = vsel %vm107_vm2, %v130_v29, 0  ;;  %v126_v32 = vpop.permute.xlu1 %125  ;;  %v372_v29 = vld [vmem:[%s1058_s5] sm:$0x3] }
 0x228   :  { %v128_v33 = vsel %vm943_vm6, 0.0, %v126_v32  ;;  %775 = vmatpush3.bf16.msra.mxu0 %v185_v31  ;;  %v373_v31 = vld [vmem:[%s1058_s5 + $0x2] sm:$0x3]  ;;  %v375_v32 = vld [vmem:[%s1058_s5 + $0x6] sm:$0x3] }
 0x229   :  { %v229_v35 = vpack.c.bf16 %v128_v33, %v128_v33  ;;  %786 = vmatprep.subr.bf16.mxu0 %v844_v1  ;;  %v376_v33 = vld [vmem:[%s1058_s5 + $0x8] sm:$0x3] }
 0x22b   :  { %v234_v36 = vsel %vm107_vm2, %v229_v35, 0  ;;  %777 = vmatmul.mubr.msk.bf16.vlgmr.msra.gmra.mxu0 %vm134_vm3, %v129_v34 }
 0x22c   :  { %781 = vmatpush3.bf16.msra.mxu1 %v234_v36  ;;  %788 = vmatprep.mubr.msk.bf16.mxu0 %vm845_vm0, %v844_v1 }
 0x22d   :  { %792 = vmatprep.subr.bf16.mxu1 %v844_v1 }
 0x22f   :  { %783 = vmatmul.mubr.msk.bf16.vlgmr.msra.gmra.mxu1 %vm134_vm3, %v741_v37 }
 0x230   :  { %794 = vmatprep.mubr.msk.bf16.mxu1 %vm845_vm0, %v844_v1 }
 0x2eb   :  { %v221_v38 = vpop.f32.mrf.mxu0 }
 0x2ec   :  { %v222_v40 = vadd.f32 %v221_v38, %v175_v19 }
 0x2ed   :  { %v778_v39 = vpop.f32.mrf.mxu0 }
 0x2ef   :  { %v224_v42 = vpop.f32.mrf.mxu0  ;;  %v270_v43 = vpop.f32.mrf.mxu1 }
 0x2f0   :  { %v276_v44 = vadd.f32 %v270_v43, %v222_v40 }
 0x2f1   :  { %v779_v45 = vpop.f32.mrf.mxu0  ;;  %v784_v46 = vpop.f32.mrf.mxu1 }
 0x2f2   :  { %v965_v47 = vadd.f32 %v281_v41, %v276_v44 }
 0x2f3   :  { %v273_v48 = vpop.f32.mrf.mxu1 }
 0x2f4   :  { %v285_v49 = vsel %vm284_vm7, %v965_v47, 0.0  ;;  %v290_v50 = vmul.f32 %v965_v47, %v965_v47  ;;  %v299_v51 = vrot.slane %v965_v47, 2 }
 0x2f5   :  { %v785_v52 = vpop.f32.mrf.mxu1  ;;  %286 = vadd.xlane.f32.xlu1 %v285_v49 }
 0x2f6   :  { %v291_v53 = vsel %vm284_vm7, %v290_v50, 0.0  ;;  %v301_v54 = vmul.f32 %v299_v51, %v965_v47 }
 0x2f7   :  { %292 = vadd.xlane.f32.xlu0 %v291_v53 }
 0x2f8   :  { %v303_v55 = vsel %vm302_vm8, %v301_v54, 0.0 }
 0x2f9   :  { %304 = vadd.xlane.f32.xlu1 %v303_v55 }
 0x37e   :  { %v287_v56 = vpop.xlane.xlu1 %286 }
 0x37f   :  { %v289_v57 = vmul.f32 0.03125, %v287_v56 }
 0x380   :  { %v293_v58 = vpop.xlane.xlu0 %292 }
 0x381   :  { %v294_v59 = vmul.f32 0.03125, %v293_v58  ;;  %v295_v60 = vmul.f32 %v289_v57, %v289_v57  ;;  %v308_v61 = vrot.slane %v289_v57, 2  ;;  %v342_v34 = vsub.f32 %v965_v47, %v289_v57 }
 0x382   :  { %v305_v62 = vpop.xlane.xlu1 %304 }
 0x383   :  { %v296_v63 = vsub.f32 %v294_v59, %v295_v60  ;;  %v310_v0 = vmul.f32 %v308_v61, %v289_v57  ;;  %v306_v2 = vmul.f32 0.03125, %v305_v62  ;;  %v357_v35 = vrot.slane %v342_v34, 2 }
 0x384   :  { %v349_v38 = vrot.slane %v342_v34, 6 }
 0x385   :  { %v297_v3 = vadd.f32 1e-05, %v296_v63  ;;  %v311_v4 = vsub.f32 %v306_v2, %v310_v0 }
 0x387   :  { %v313_v5 = vrot.slane %v297_v3, 2  ;;  %v316_v7 = vmul.f32 %v311_v4, %v311_v4  ;;  %v340_v19 = vsub.f32 0.0, %v311_v4 }
 0x389   :  { %v315_v6 = vmul.f32 %v313_v5, %v297_v3  ;;  %v325_v14 = vadd.f32 %v313_v5, %v297_v3 }
 0x38b   :  { %v317_v8 = vsub.f32 %v315_v6, %v316_v7  ;;  %v743_v6 = vld [vmem:[%s1059_s6 + $0x4] sm:$0xf] }
 0x38d   :  { %814 = vrsqrt.f32 %v317_v8  ;;  %vm320_vm9 = vcmp.eq.f32.partialorder %v317_v8, inf  ;;  %v323_v11 = vand.u32 2147483648, %v317_v8  ;;  %vm322_vm10 = vcmp.eq.f32.partialorder %v317_v8, 0.0 }
 0x39a   :  { %v815_v9 = vpop.eup %814 }
 0x39b   :  { %v319_v10 = vmul.f32 %v815_v9, %v317_v8  ;;  %v583_v9 = vld [vmem:[%s1060_s7] sm:$0xff] }
 0x39d   :  { %v321_v12 = vsel %vm320_vm9, %v317_v8, %v319_v10 }
 0x39e   :  { %v324_v13 = vsel %vm322_vm10, %v323_v11, %v321_v12 }
 0x39f   :  { %v326_v15 = vmul.f32 2.0, %v324_v13  ;;  %v331_v18 = vrot.slane %v324_v13, 6  ;;  %v338_v27 = vadd.f32 %v324_v13, %v297_v3 }
 0x3a1   :  { %v327_v16 = vadd.f32 %v326_v15, %v325_v14  ;;  %v333_v22 = vadd.f32 %v331_v18, %v297_v3 }
 0x3a3   :  { %v328_v17 = vmul.f32 %v327_v16, %v317_v8 }
 0x3a5   :  { %816 = vrsqrt.f32 %v328_v17  ;;  %v435_v17 = vld [vmem:[%s1059_s6] sm:$0xf] }
 0x3b2   :  { %v817_v20 = vpop.eup %816 }
 0x3b3   :  { %v341_v21 = vmul.f32 %v817_v20, %v340_v19  ;;  %v335_v23 = vrot.slane %v817_v20, 6  ;;  %v339_v28 = vmul.f32 %v817_v20, %v338_v27 }
 0x3b5   :  { %354 = vperm.xlu0 %811, %v341_v21   ;;  %v337_v24 = vmul.f32 %v335_v23, %v333_v22 }
 0x3b7   :  { %345 = vperm.xlu1 %812, %v337_v24  }
 0x3b9   :  { %388 = vperm.xlu0 %811, %v374_v25  }
 0x3bb   :  { %366 = vperm.xlu1 %812, %v339_v28  }
 0x3bd   :  { %379 = vperm.xlu0 %811, %v372_v29  }
 0x3bf   :  { %403 = vperm.xlu1 %812, %v373_v31  }
 0x3c1   :  { %395 = vperm.xlu0 %811, %v375_v32  }
 0x3c3   :  { %410 = vperm.xlu1 %812, %v376_v33  }
 0x430   :  { %v355_v36 = vpop.permute.xlu0 %354 }
 0x431   :  { %v359_v37 = vmul.f32 %v357_v35, %v355_v36  ;;  %v370_v45 = vmul.f32 %v355_v36, %v342_v34 }
 0x432   :  { %v346_v39 = vpop.permute.xlu1 %345 }
 0x433   :  { %v361_v40 = vrot.slane %v359_v37, 6  ;;  %v351_v41 = vmul.f32 %v349_v38, %v346_v39 }
 0x434   :  { %v389_v42 = vpop.permute.xlu0 %388 }
 0x435   :  { %v363_v43 = vadd.f32 %v361_v40, %v351_v41 }
 0x436   :  { %v367_v44 = vpop.permute.xlu1 %366 }
 0x437   :  { %v383_v46 = vrot.slane %v363_v43, 2  ;;  %v369_v48 = vmul.f32 %v367_v44, %v357_v35 }
 0x438   :  { %v380_v49 = vpop.permute.xlu0 %379 }
 0x439   :  { %v371_v50 = vadd.f32 %v370_v45, %v369_v48  ;;  %v400_v52 = vmul.f32 %v389_v42, %v383_v46  ;;  %v385_v53 = vmul.f32 %v383_v46, %v380_v49 }
 0x43a   :  { %v404_v51 = vpop.permute.xlu1 %403 }
 0x43b   :  { %v406_v54 = vmul.f32 %v404_v51, %v371_v50  ;;  %v391_v47 = vmul.f32 %v389_v42, %v371_v50 }
 0x43c   :  { %v396_v57 = vpop.permute.xlu0 %395 }
 0x43d   :  { %v392_v55 = vadd.f32 %v391_v47, %v385_v53  ;;  %v407_v56 = vadd.f32 %v406_v54, %v400_v52 }
 0x43e   :  { %v411_v58 = vpop.permute.xlu1 %410 }
 0x43f   :  { %v398_v59 = vadd.f32 %v396_v57, %v392_v55  ;;  %v413_v60 = vadd.f32 %v411_v58, %v407_v56 }
 0x441   :  { %v414_v61 = vmax.f32 %v413_v60, 0.0  ;;  %v399_v62 = vmax.f32 %v398_v59, 0.0 }
 0x443   :  { %v416_v63 = vrot.slane %v414_v61, 6 }
 0x445   :  { %v419_v0 = vsel %vm418_vm11, %v399_v62, %v416_v63 }
 0x446   :  { %420 = vrot.lane.b32.xlu1 %v419_v0, %s846_s0  ;;  %v439_v2 = vpack.c.bf16 %v419_v0, %v419_v0 }
 0x448   :  { %v445_v3 = vsel %vm418_vm11, %v439_v2, 0 }
 0x449   :  { %787 = vmatpush3.bf16.msra.mxu0 %v445_v3 }
 0x44a   :  { %798 = vmatprep.subr.bf16.mxu0 %v844_v1 }
 0x44c   :  { %789 = vmatmul.mubr.msk.bf16.vlgmr.msra.gmra.mxu0 %vm440_vm12, %v743_v6 }
 0x44d   :  { %800 = vmatprep.mubr.msk.bf16.mxu0 %vm845_vm0, %v844_v1 }
 0x4b8   :  { %v421_v4 = vpop.permute.xlu1 %420 }
 0x4b9   :  { %v422_v5 = vsel %vm109_vm4, %v421_v4, %v419_v0 }
 0x4ba   :  { %423 = vrot.lane.b32.xlu0 %v422_v5, %s846_s0 }
 0x50c   :  { %v481_v26 = vpop.f32.mrf.mxu0 }
 0x50e   :  { %v790_v18 = vpop.f32.mrf.mxu0 }
 0x510   :  { %v484_v19 = vpop.f32.mrf.mxu0 }
 0x512   :  { %v791_v20 = vpop.f32.mrf.mxu0 }
 0x52c   :  { %v424_v7 = vpop.permute.xlu0 %423 }
 0x52d   :  { %v425_v8 = vsel %vm109_vm4, %v424_v7, %v419_v0 }
 0x52e   :  { %431 = vrot.lane.b32.xlu0 %v425_v8, %s849_s18  ;;  %427 = vrot.lane.b32.xlu1 %v425_v8, %s848_s17 }
 0x532   :  { %586 = vperm.xlu1 %812, %v583_v9  }
 0x5a0   :  { %v432_v10 = vpop.permute.xlu0 %431  ;;  %v428_v11 = vpop.permute.xlu1 %427 }
 0x5a1   :  { %v434_v12 = vsel %vm943_vm6, 0.0, %v432_v10  ;;  %v430_v1 = vsel %vm937_vm5, 0.0, %v428_v11  ;;  %v676_v10 = vld [vmem:[%s1061_s8 + $0x8] sm:$0xf] }
 0x5a2   :  { %v535_v13 = vpack.c.bf16 %v434_v12, %v434_v12  ;;  %v436_v14 = vpack.c.bf16 %v430_v1, %v430_v1  ;;  %v674_v1 = vld [vmem:[%s1061_s8] sm:$0xf] }
 0x5a4   :  { %v540_v15 = vsel %vm418_vm11, %v535_v13, 0  ;;  %v491_v16 = vsel %vm418_vm11, %v436_v14, 0  ;;  %v675_v13 = vld [vmem:[%s1061_s8 + $0x4] sm:$0xf]  ;;  %v677_v14 = vld [vmem:[%s1061_s8 + $0xc] sm:$0xf] }
 0x5a5   :  { %793 = vmatpush3.bf16.msra.mxu1 %v491_v16  ;;  %799 = vmatpush3.bf16.msra.mxu0 %v540_v15  ;;  %v678_v15 = vld [vmem:[%s1061_s8 + $0x10] sm:$0xf]  ;;  %s850_s8 = smov [#allocation2]  }
 0x5a6   :  { %s728_s21 = sshll.u32 %s850_s8, 4  ;;  %s729_s21 = int_to_ptr.vmem [resolvable:$true] %s728_s21 }
 0x5a7   :  { %s822_s3 = scalar_lea.vmem %s729_s21, 128  ;;  %p827_p1 = scmp.lt.s32.totalorder %s729_s21, %s729_s21 }
 0x5a8   :  { %795 = vmatmul.mubr.msk.bf16.vlgmr.msra.gmra.mxu1 %vm440_vm12, %v435_v17  ;;  %801 = vmatmul.mubr.msk.bf16.vlgmr.msra.gmra.mxu0 %vm440_vm12, %v746_v30  ;;  %p823_p0 = scmp.ne.s32.totalorder %s729_s21, %s822_s3  ;;  %p828_p2 = scmp.lt.s32.totalorder %s822_s3, %s822_s3 }
 0x5aa   :  { %p829_p3 = por %p828_p2, %p827_p1 }
 0x5ac   :  { %p830_p4 = pnand %p829_p3, %p823_p0 }
 0x5ad   :  { %v587_v27 = vpop.permute.xlu1 %586 }
 0x668   :  { %v527_v21 = vpop.f32.mrf.mxu1  ;;  %v576_v22 = vpop.f32.mrf.mxu0 }
 0x669   :  { %v528_v23 = vadd.f32 %v527_v21, %v481_v26 }
 0x66a   :  { %v796_v24 = vpop.f32.mrf.mxu1  ;;  %v802_v25 = vpop.f32.mrf.mxu0 }
 0x66b   :  { %v582_v28 = vadd.f32 %v576_v22, %v528_v23 }
 0x66c   :  { %v530_v29 = vpop.f32.mrf.mxu1  ;;  %v579_v31 = vpop.f32.mrf.mxu0 }
 0x66d   :  { %v1022_v32 = vadd.f32 %v587_v27, %v582_v28 }
 0x66e   :  { %v797_v33 = vpop.f32.mrf.mxu1  ;;  %v803_v34 = vpop.f32.mrf.mxu0 }
 0x66f   :  { %v591_v35 = vsel %vm590_vm13, %v1022_v32, 0.0  ;;  %v595_v36 = vmul.f32 %v1022_v32, %v1022_v32  ;;  %v604_v37 = vrot.slane %v1022_v32, 4 }
 0x670   :  { %592 = vadd.xlane.f32.xlu0 %v591_v35 }
 0x671   :  { %v596_v38 = vsel %vm590_vm13, %v595_v36, 0.0  ;;  %v606_v39 = vmul.f32 %v604_v37, %v1022_v32 }
 0x672   :  { %597 = vadd.xlane.f32.xlu1 %v596_v38 }
 0x673   :  { %v607_v40 = vsel %vm284_vm7, %v606_v39, 0.0 }
 0x674   :  { %608 = vadd.xlane.f32.xlu0 %v607_v40 }
 0x6f9   :  { %v593_v41 = vpop.xlane.xlu0 %592 }
 0x6fa   :  { %v594_v42 = vmul.f32 0.03125, %v593_v41 }
 0x6fb   :  { %v598_v43 = vpop.xlane.xlu1 %597 }
 0x6fc   :  { %v599_v44 = vmul.f32 0.03125, %v598_v43  ;;  %v600_v45 = vmul.f32 %v594_v42, %v594_v42  ;;  %v612_v46 = vrot.slane %v594_v42, 4  ;;  %v646_v16 = vsub.f32 %v1022_v32, %v594_v42 }
 0x6fd   :  { %v609_v48 = vpop.xlane.xlu0 %608 }
 0x6fe   :  { %v601_v49 = vsub.f32 %v599_v44, %v600_v45  ;;  %v614_v50 = vmul.f32 %v612_v46, %v594_v42  ;;  %v610_v51 = vmul.f32 0.03125, %v609_v48  ;;  %v653_v17 = vrot.slane %v646_v16, 4 }
 0x700   :  { %v602_v52 = vadd.f32 1e-05, %v601_v49  ;;  %v615_v53 = vsub.f32 %v610_v51, %v614_v50 }
 0x702   :  { %v617_v54 = vrot.slane %v602_v52, 4  ;;  %v620_v55 = vmul.f32 %v615_v53, %v615_v53  ;;  %v644_v4 = vsub.f32 0.0, %v615_v53 }
 0x704   :  { %v619_v47 = vmul.f32 %v617_v54, %v602_v52  ;;  %v629_v62 = vadd.f32 %v617_v54, %v602_v52 }
 0x706   :  { %v621_v56 = vsub.f32 %v619_v47, %v620_v55 }
 0x708   :  { %818 = vrsqrt.f32 %v621_v56  ;;  %vm624_vm14 = vcmp.eq.f32.partialorder %v621_v56, inf  ;;  %v627_v59 = vand.u32 2147483648, %v621_v56  ;;  %vm626_vm15 = vcmp.eq.f32.partialorder %v621_v56, 0.0 }
 0x715   :  { %v819_v57 = vpop.eup %818 }
 0x716   :  { %v623_v58 = vmul.f32 %v819_v57, %v621_v56 }
 0x718   :  { %v625_v60 = vsel %vm624_vm14, %v621_v56, %v623_v58 }
 0x719   :  { %v628_v61 = vsel %vm626_vm15, %v627_v59, %v625_v60 }
 0x71a   :  { %v630_v63 = vmul.f32 2.0, %v628_v61  ;;  %v635_v3 = vrot.slane %v628_v61, 4  ;;  %v642_v11 = vadd.f32 %v628_v61, %v602_v52 }
 0x71c   :  { %v631_v0 = vadd.f32 %v630_v63, %v629_v62  ;;  %v637_v7 = vadd.f32 %v635_v3, %v602_v52 }
 0x71e   :  { %v632_v2 = vmul.f32 %v631_v0, %v621_v56 }
 0x720   :  { %820 = vrsqrt.f32 %v632_v2 }
 0x72d   :  { %v821_v5 = vpop.eup %820 }
 0x72e   :  { %v645_v6 = vmul.f32 %v821_v5, %v644_v4  ;;  %v639_v8 = vrot.slane %v821_v5, 4  ;;  %v643_v12 = vmul.f32 %v821_v5, %v642_v11 }
 0x730   :  { %658 = vperm.xlu0 %811, %v645_v6   ;;  %v641_v9 = vmul.f32 %v639_v8, %v637_v7 }
 0x732   :  { %649 = vperm.xlu1 %812, %v641_v9  }
 0x734   :  { %690 = vperm.xlu0 %811, %v676_v10  }
 0x736   :  { %668 = vperm.xlu1 %812, %v643_v12  }
 0x738   :  { %681 = vperm.xlu0 %811, %v674_v1  }
 0x73a   :  { %705 = vperm.xlu1 %812, %v675_v13  }
 0x73c   :  { %697 = vperm.xlu0 %811, %v677_v14  }
 0x73e   :  { %712 = vperm.xlu1 %812, %v678_v15  }
 0x7ab   :  { %v659_v30 = vpop.permute.xlu0 %658 }
 0x7ac   :  { %v661_v26 = vmul.f32 %v659_v30, %v653_v17  ;;  %v672_v24 = vmul.f32 %v659_v30, %v646_v16 }
 0x7ad   :  { %v650_v18 = vpop.permute.xlu1 %649 }
 0x7ae   :  { %v663_v19 = vrot.slane %v661_v26, 4  ;;  %v655_v20 = vmul.f32 %v653_v17, %v650_v18 }
 0x7af   :  { %v691_v21 = vpop.permute.xlu0 %690 }
 0x7b0   :  { %v665_v22 = vadd.f32 %v663_v19, %v655_v20 }
 0x7b1   :  { %v669_v23 = vpop.permute.xlu1 %668 }
 0x7b2   :  { %v685_v25 = vrot.slane %v665_v22, 4  ;;  %v671_v27 = vmul.f32 %v669_v23, %v653_v17 }
 0x7b3   :  { %v682_v28 = vpop.permute.xlu0 %681 }
 0x7b4   :  { %v673_v29 = vadd.f32 %v672_v24, %v671_v27  ;;  %v702_v33 = vmul.f32 %v691_v21, %v685_v25  ;;  %v687_v34 = vmul.f32 %v685_v25, %v682_v28 }
 0x7b5   :  { %v706_v31 = vpop.permute.xlu1 %705 }
 0x7b6   :  { %v708_v35 = vmul.f32 %v706_v31, %v673_v29  ;;  %v693_v36 = vmul.f32 %v691_v21, %v673_v29 }
 0x7b7   :  { %v698_v38 = vpop.permute.xlu0 %697 }
 0x7b8   :  { %v694_v32 = vadd.f32 %v693_v36, %v687_v34  ;;  %v709_v37 = vadd.f32 %v708_v35, %v702_v33 }
 0x7b9   :  { %v713_v39 = vpop.permute.xlu1 %712 }
 0x7ba   :  { %v700_v40 = vadd.f32 %v698_v38, %v694_v32  ;;  %v715_v41 = vadd.f32 %v713_v39, %v709_v37 }
 0x7bc   :  { %v716_v42 = vmax.f32 %v715_v41, 0.0  ;;  %v701_v43 = vmax.f32 %v700_v40, 0.0 }
 0x7be   :  { %v718_v44 = vrot.slane %v716_v42, 4 }
 0x7c0   :  { %v720_v45 = vsel %vm107_vm2, %v701_v43, %v718_v44 }
 0x7c1   :  { %721 = vst.msk [vmem:[#allocation2] sm:$0xff] %vm590_vm13, %v720_v45 }
 0x7c2   :  { %833 = shalt.err (!%p830_p4)
}
 0x7c3   :  { %731 = dma.vmem_to_hbm [thread:$0]  %s729_s21, 128, %s1062_s9, [#allocation3]  }
 0x7c4   :  { %842 = dma.done.wait [#allocation3], 128  }
 0x7c5   :  { %843 = vsyncadd [#allocation3], 4294967168 }
 0x7c6   :  { %735 = vsyncpa [#allocation3], 1 }

</bundles_post_ra>
